<compile_context>
chip_gen: v7x
topology: tpu7x:2x2x1
jax: 0.10.0
libtpu: 0.0.40
codegen_flags: <defaults>
</compile_context>

<pallas_src>
import functools

import jax
import jax.numpy as jnp
from jax.experimental import pallas as pl
from jax.experimental.pallas import tpu as pltpu


def _lshift(a, k):
    """a[..., t] <- a[..., t + k] along the lane axis (wrap-around only pollutes the
    per-segment tail lanes, which later stages never read and the wrapper crops)."""
    s = a.shape[-1]
    return pltpu.roll(a, shift=(-k) % s, axis=1)


def _inception_kernel(x_ref, w1_ref, w2_ref, w3_ref, mask_ref, out_ref, *, O, P):
    """One grid step: Bt batch elements packed as length-L segments along lanes.

    x_ref    : (1, C, S)        f32   S = lane width (multiple of 128)
    w1_ref   : (3O, 3C)         bf16  fused stage-1 weights, rows [mod7|mod10|mod15]
    w2_ref   : (4O+P, 9O)       bf16  block-diag stage-2, rows [mod10(2O)|mod15(2O)|mod7(P)]
    w3_ref   : (2P, 12O)        bf16  block-diag stage-3, rows [mod10(P)|mod15(P)]
    mask_ref : (1, S)           f32   1.0 where (lane % L) >= 8 (causal-pad head -> 0)
    out_ref  : (1, CP, S)       CP = 3P padded to a multiple of 8 sublanes
    """
    f32 = jnp.float32
    bf16 = jnp.bfloat16
    relu = lambda v: jnp.maximum(v, 0.0)

    x = x_ref[0]                                   # (C, S) f32
    S = x.shape[-1]

    # ---- stage 1 (dilation 1): one fused tap matmul, K = 3C.
    x1 = jnp.concatenate([x, _lshift(x, 1), _lshift(x, 2)], axis=0).astype(bf16)      # (3C, S)
    h1 = relu(jnp.dot(w1_ref[...], x1, preferred_element_type=f32))                    # (3O, S)

    # ---- stage 2 (dilation 2): block-diagonal fused tap matmul, K = 9O.
    x2 = jnp.concatenate([h1, _lshift(h1, 2), _lshift(h1, 4)], axis=0).astype(bf16)    # (9O, S)
    h2 = relu(jnp.dot(w2_ref[...], x2, preferred_element_type=f32))                    # (4O+P, S)
    y7 = h2[4 * O:4 * O + P]                       # mod7 branch output (f32)
    h2b = h2[0:4 * O]                              # mod10/mod15 hidden (sublane offset 0)

    # ---- stage 3 (dilation 4): block-diagonal fused tap matmul, K = 12O.
    x3 = jnp.concatenate([h2b, _lshift(h2b, 4), _lshift(h2b, 8)], axis=0).astype(bf16)  # (12O,S)
    h3 = relu(jnp.dot(w3_ref[...], x3, preferred_element_type=f32))                     # (2P, S)

    # causal left-pad of 8: rotate right by 8 lanes, zero the head of every segment.
    y1015 = pltpu.roll(h3, shift=8, axis=1) * mask_ref[...]                             # (2P, S)

    # single full-width slab store, channel order [mod7 | mod10 | mod15 | pad].
    CP = out_ref.shape[1]
    pieces = [y7, y1015]
    if CP > 3 * P:
        pieces.append(jnp.zeros((CP - 3 * P, S), f32))
    out_ref[0] = jnp.concatenate(pieces, axis=0).astype(out_ref.dtype)


def pack_inception_params(params, dtype=jnp.bfloat16):
    """One-time weight packing (call at parameter-load time, NOT per forward).

    params: the 8 Conv1d weights (Cout, Cin, 3) in module order
            (w7_1, w7_3, w10_1, w10_3, w10_5, w15_1, w15_3, w15_5).
    Returns (W1, W2, W3) with taps fused along the contraction dim and the three
    branches fused along Cout (stage 1) / block-diagonally (stages 2, 3).
    """
    ws = [jnp.asarray(w, jnp.float32) for w in params]
    w7_1, w7_3, w10_1, w10_3, w10_5, w15_1, w15_3, w15_5 = ws
    O, C, _ = w7_1.shape
    P = w7_3.shape[0]

    W1 = jnp.zeros((3 * O, 3 * C), jnp.float32)
    W2 = jnp.zeros((4 * O + P, 9 * O), jnp.float32)
    W3 = jnp.zeros((2 * P, 12 * O), jnp.float32)
    for k in range(3):
        # stage 1: rows [mod7 | mod10 | mod15], tap-k channel block in the columns.
        W1 = W1.at[0 * O:1 * O, k * C:(k + 1) * C].set(w7_1[:, :, k])
        W1 = W1.at[1 * O:2 * O, k * C:(k + 1) * C].set(w10_1[:, :, k])
        W1 = W1.at[2 * O:3 * O, k * C:(k + 1) * C].set(w15_1[:, :, k])
        # stage 2: rows [mod10(2O) | mod15(2O) | mod7(P)], cols follow stage-1 rows.
        c0 = 3 * O * k
        W2 = W2.at[0:2 * O, c0 + O:c0 + 2 * O].set(w10_3[:, :, k])
        W2 = W2.at[2 * O:4 * O, c0 + 2 * O:c0 + 3 * O].set(w15_3[:, :, k])
        W2 = W2.at[4 * O:4 * O + P, c0:c0 + O].set(w7_3[:, :, k])
        # stage 3: rows [mod10(P) | mod15(P)], cols follow h2b rows per tap.
        d0 = 4 * O * k
        W3 = W3.at[0:P, d0:d0 + 2 * O].set(w10_5[:, :, k])
        W3 = W3.at[P:2 * P, d0 + 2 * O:d0 + 4 * O].set(w15_5[:, :, k])
    return W1.astype(dtype), W2.astype(dtype), W3.astype(dtype)


def inception_forward(x, W1, W2, W3, *, block_batch=None):
    """x: (B, C, L); W1/W2/W3 from pack_inception_params.  Returns (B, 3P, L-6)
    in channel order [mod7 | mod10 | mod15] (matching Inception.forward)."""
    B, C, L = x.shape
    O = W1.shape[0] // 3
    P = W3.shape[0] // 2
    assert W1.shape == (3 * O, 3 * C)
    assert W2.shape == (4 * O + P, 9 * O)
    assert W3.shape == (2 * P, 12 * O)
    assert L >= 15, "need L >= 15 for the dilation-4 conv"
    Lout = L - 6
    out_dtype = x.dtype

    # Batch packing: Bt segments of length L end-to-end on the lane axis.  Default
    # targets ~1024 lanes/step (fewer, fatter steps; ~0.35us fixed per-step overhead).
    # On v7x choose block_batch so the number of grid steps is a multiple of 2.
    if block_batch is None:
        block_batch = 1024 // L if L <= 1024 else 1
    Bt = max(1, min(B, block_batch))
    Bb = -(-B // Bt)
    Bp = Bb * Bt
    if Bp != B:
        x = jnp.pad(x, ((0, Bp - B), (0, 0), (0, 0)))
    S0 = Bt * L
    S = -(-S0 // 128) * 128              # lane-dense operand / store width
    xf = (x.astype(jnp.float32)
            .reshape(Bb, Bt, C, L)
            .transpose(0, 2, 1, 3)
            .reshape(Bb, C, S0))
    if S != S0:
        xf = jnp.pad(xf, ((0, 0), (0, 0), (0, S - S0)))

    # causal-pad mask: 1.0 where in-segment position >= 8 (kernel=3, dilations 1/2/4).
    pad_mask = ((jnp.arange(S) % L) >= 8).astype(jnp.float32).reshape(1, S)

    CP3 = 3 * P
    CP = ((CP3 + 7) // 8) * 8            # pad output channels to a sublane multiple
    itemsize = jnp.dtype(out_dtype).itemsize
    flops = 2 * Bb * S * ((3 * O) * (3 * C) + (4 * O + P) * (9 * O) + (2 * P) * (12 * O))
    bytes_accessed = (xf.size * 4 + Bb * (W1.size + W2.size + W3.size) * 2
                      + Bb * pad_mask.size * 4 + Bb * CP * S * itemsize)

    out_flat = pl.pallas_call(
        functools.partial(_inception_kernel, O=O, P=P),
        grid=(Bb,),
        in_specs=[
            pl.BlockSpec((1, C, S), lambda b: (b, 0, 0)),
            pl.BlockSpec(W1.shape, lambda b: (0, 0)),
            pl.BlockSpec(W2.shape, lambda b: (0, 0)),
            pl.BlockSpec(W3.shape, lambda b: (0, 0)),
            pl.BlockSpec((1, S), lambda b: (0, 0)),
        ],
        out_specs=pl.BlockSpec((1, CP, S), lambda b: (b, 0, 0)),
        out_shape=jax.ShapeDtypeStruct((Bb, CP, S), out_dtype),
        compiler_params=pltpu.CompilerParams(
            dimension_semantics=("parallel",)),
        cost_estimate=pl.CostEstimate(
            flops=flops, transcendentals=0, bytes_accessed=bytes_accessed),
    )(xf, W1, W2, W3, pad_mask)

    # Unpack per-segment layout back to (B, 3P, L-6) — layout plumbing only.  A
    # downstream consumer that can take the packed (Bb, CP, S) layout should skip this.
    out = (out_flat[:, :CP3, :S0]
             .reshape(Bb, CP3, Bt, L)
             .transpose(0, 2, 1, 3)
             .reshape(Bp, CP3, L))
    return out[:B, :, :Lout]


# ---------------- pure-JAX reference (module semantics, f32) ----------------
def _dilconv_ref(x, w, d):
    lout = x.shape[2] - 2 * d
    acc = jnp.zeros((x.shape[0], w.shape[0], lout), jnp.float32)
    for k in range(3):
        acc = acc + jnp.einsum('oi,bil->bol', w[:, :, k], x[:, :, k * d:k * d + lout])
    return acc


def inception_ref(x, params):
    (w7_1, w7_3, w10_1, w10_3, w10_5, w15_1, w15_3, w15_5) = params
    relu = lambda v: jnp.maximum(v, 0.0)

    m7 = relu(_dilconv_ref(relu(_dilconv_ref(x, w7_1, 1)), w7_3, 2))

    h = relu(_dilconv_ref(x, w10_1, 1))
    h = relu(_dilconv_ref(h, w10_3, 2))
    m10 = relu(jnp.pad(_dilconv_ref(h, w10_5, 4), ((0, 0), (0, 0), (8, 0))))

    h = relu(_dilconv_ref(x, w15_1, 1))
    h = relu(_dilconv_ref(h, w15_3, 2))
    m15 = relu(jnp.pad(_dilconv_ref(h, w15_5, 4), ((0, 0), (0, 0), (8, 0))))

    return jnp.concatenate([m7, m10, m15], axis=1)


if __name__ == "__main__":
    # in_channels=4, out_channels=8, pool_features=4, batch=8, length=32.
    B, C, O, P, L = 8, 4, 8, 4, 32

    key = jax.random.PRNGKey(0)
    kx, *wkeys = jax.random.split(key, 9)

    def init_w(k, cout, cin):
        bound = 1.0 / ((cin * 3) ** 0.5)  # kaiming-uniform style, deterministic
        return jax.random.uniform(k, (cout, cin, 3), jnp.float32, -bound, bound)

    params = (
        init_w(wkeys[0], O, C),       # mod7_1
        init_w(wkeys[1], P, O),       # mod7_3
        init_w(wkeys[2], O, C),       # mod10_1
        init_w(wkeys[3], 2 * O, O),   # mod10_3
        init_w(wkeys[4], P, 2 * O),   # mod10_5
        init_w(wkeys[5], O, C),       # mod15_1
        init_w(wkeys[6], 2 * O, O),   # mod15_3
        init_w(wkeys[7], P, 2 * O),   # mod15_5
    )
    x = jax.random.normal(kx, (B, C, L), jnp.float32)

    # one-time weight packing (parameter-load time, not per forward call)
    W1, W2, W3 = pack_inception_params(params)

    fwd = jax.jit(inception_forward, static_argnames=("block_batch",))
    out = jax.block_until_ready(fwd(x, W1, W2, W3))                  # 1 fat step (v6e/v5e style)
    out2 = jax.block_until_ready(fwd(x, W1, W2, W3, block_batch=4))  # 2 parallel steps (v7x style)
    ref = jax.block_until_ready(inception_ref(x, params))

    assert out.shape == (B, 3 * P, L - 6), out.shape
    assert out2.shape == (B, 3 * P, L - 6), out2.shape
    for o in (out, out2):
        max_err = float(jnp.max(jnp.abs(o - ref)))
        # bf16 MXU inputs with f32 accumulation -> loosened tolerance vs f32 reference.
        assert jnp.allclose(o, ref, atol=3e-2, rtol=3e-2), f"mismatch vs reference, max_err={max_err}"
    print("KERNEL_OK")
</pallas_src>

<mosaic_0001>
module attributes {stable_mosaic.version = 11 : i64} {
  func.func @_inception_kernel(%arg0: i32, %arg1: memref<1x4x256xf32, #tpu.memory_space<vmem>>, %arg2: memref<24x12xbf16, #tpu.memory_space<vmem>>, %arg3: memref<36x72xbf16, #tpu.memory_space<vmem>>, %arg4: memref<8x96xbf16, #tpu.memory_space<vmem>>, %arg5: memref<1x256xf32, #tpu.memory_space<vmem>>, %arg6: memref<1x16x256xf32, #tpu.memory_space<vmem>>) attributes {dimension_semantics = [#tpu.dimension_semantics<parallel>], iteration_bounds = array<i64: 1>, scalar_prefetch = 0 : i64, scratch_operands = 0 : i64, tpu.core_type = #tpu.core_type<tc>, window_params = [{transform_indices = @transform_0, window_bounds = array<i64: 1, 4, 256>}, {pipeline_mode = #tpu.pipeline_mode<synchronous>, transform_indices = @transform_1, window_bounds = array<i64: 24, 12>}, {pipeline_mode = #tpu.pipeline_mode<synchronous>, transform_indices = @transform_2, window_bounds = array<i64: 36, 72>}, {pipeline_mode = #tpu.pipeline_mode<synchronous>, transform_indices = @transform_3, window_bounds = array<i64: 8, 96>}, {pipeline_mode = #tpu.pipeline_mode<synchronous>, transform_indices = @transform_4, window_bounds = array<i64: 1, 256>}, {transform_indices = @transform_5, window_bounds = array<i64: 1, 16, 256>}]} {
    %c0 = arith.constant 0 : index
    %c0_0 = arith.constant 0 : index
    %c0_1 = arith.constant 0 : index
    %0 = vector.load %arg1[%c0, %c0_0, %c0_1] : memref<1x4x256xf32, #tpu.memory_space<vmem>>, vector<1x4x256xf32>
    %1 = vector.shape_cast %0 : vector<1x4x256xf32> to vector<4x256xf32>
    %c255_i32 = arith.constant 255 : i32
    %2 = tpu.dynamic_rotate %1 by %c255_i32 dim 1 : vector<4x256xf32>, i32 -> vector<4x256xf32>
    %c254_i32 = arith.constant 254 : i32
    %3 = tpu.dynamic_rotate %1 by %c254_i32 dim 1 : vector<4x256xf32>, i32 -> vector<4x256xf32>
    %4 = tpu.concatenate %1, %2, %3 in 0 : vector<4x256xf32>, vector<4x256xf32>, vector<4x256xf32> -> vector<12x256xf32>
    %5 = arith.truncf %4 : vector<12x256xf32> to vector<12x256xbf16>
    %c0_2 = arith.constant 0 : index
    %c0_3 = arith.constant 0 : index
    %6 = vector.load %arg2[%c0_2, %c0_3] : memref<24x12xbf16, #tpu.memory_space<vmem>>, vector<24x12xbf16>
    %cst = arith.constant dense<0.000000e+00> : vector<24x256xf32>
    %7 = tpu.matmul %6, %5, %cst {dimension_numbers = #tpu.dot_dimension_numbers<[1], [0], [0], [1], [0, 0, 1, 1], [], []>} : vector<24x12xbf16>, vector<12x256xbf16>, vector<24x256xf32> -> vector<24x256xf32>
    %cst_4 = arith.constant 0.000000e+00 : f32
    %8 = vector.broadcast %cst_4 : f32 to vector<24x256xf32>
    %9 = arith.maximumf %7, %8 : vector<24x256xf32>
    %c254_i32_5 = arith.constant 254 : i32
    %10 = tpu.dynamic_rotate %9 by %c254_i32_5 dim 1 : vector<24x256xf32>, i32 -> vector<24x256xf32>
    %c252_i32 = arith.constant 252 : i32
    %11 = tpu.dynamic_rotate %9 by %c252_i32 dim 1 : vector<24x256xf32>, i32 -> vector<24x256xf32>
    %12 = tpu.concatenate %9, %10, %11 in 0 : vector<24x256xf32>, vector<24x256xf32>, vector<24x256xf32> -> vector<72x256xf32>
    %13 = arith.truncf %12 : vector<72x256xf32> to vector<72x256xbf16>
    %c0_6 = arith.constant 0 : index
    %c0_7 = arith.constant 0 : index
    %14 = vector.load %arg3[%c0_6, %c0_7] : memref<36x72xbf16, #tpu.memory_space<vmem>>, vector<36x72xbf16>
    %cst_8 = arith.constant dense<0.000000e+00> : vector<36x256xf32>
    %15 = tpu.matmul %14, %13, %cst_8 {dimension_numbers = #tpu.dot_dimension_numbers<[1], [0], [0], [1], [0, 0, 1, 1], [], []>} : vector<36x72xbf16>, vector<72x256xbf16>, vector<36x256xf32> -> vector<36x256xf32>
    %cst_9 = arith.constant 0.000000e+00 : f32
    %16 = vector.broadcast %cst_9 : f32 to vector<36x256xf32>
    %17 = arith.maximumf %15, %16 : vector<36x256xf32>
    %18 = vector.extract_strided_slice %17 {offsets = [32, 0], sizes = [4, 256], strides = [1, 1]} : vector<36x256xf32> to vector<4x256xf32>
    %19 = vector.extract_strided_slice %17 {offsets = [0, 0], sizes = [32, 256], strides = [1, 1]} : vector<36x256xf32> to vector<32x256xf32>
    %c252_i32_10 = arith.constant 252 : i32
    %20 = tpu.dynamic_rotate %19 by %c252_i32_10 dim 1 : vector<32x256xf32>, i32 -> vector<32x256xf32>
    %c248_i32 = arith.constant 248 : i32
    %21 = tpu.dynamic_rotate %19 by %c248_i32 dim 1 : vector<32x256xf32>, i32 -> vector<32x256xf32>
    %22 = tpu.concatenate %19, %20, %21 in 0 : vector<32x256xf32>, vector<32x256xf32>, vector<32x256xf32> -> vector<96x256xf32>
    %23 = arith.truncf %22 : vector<96x256xf32> to vector<96x256xbf16>
    %c0_11 = arith.constant 0 : index
    %c0_12 = arith.constant 0 : index
    %24 = vector.load %arg4[%c0_11, %c0_12] : memref<8x96xbf16, #tpu.memory_space<vmem>>, vector<8x96xbf16>
    %cst_13 = arith.constant dense<0.000000e+00> : vector<8x256xf32>
    %25 = tpu.matmul %24, %23, %cst_13 {dimension_numbers = #tpu.dot_dimension_numbers<[1], [0], [0], [1], [0, 0, 1, 1], [], []>} : vector<8x96xbf16>, vector<96x256xbf16>, vector<8x256xf32> -> vector<8x256xf32>
    %cst_14 = arith.constant 0.000000e+00 : f32
    %26 = vector.broadcast %cst_14 : f32 to vector<8x256xf32>
    %27 = arith.maximumf %25, %26 : vector<8x256xf32>
    %c8_i32 = arith.constant 8 : i32
    %28 = tpu.dynamic_rotate %27 by %c8_i32 dim 1 : vector<8x256xf32>, i32 -> vector<8x256xf32>
    %c0_15 = arith.constant 0 : index
    %c0_16 = arith.constant 0 : index
    %29 = vector.load %arg5[%c0_15, %c0_16] : memref<1x256xf32, #tpu.memory_space<vmem>>, vector<1x256xf32>
    %30 = vector.broadcast %29 : vector<1x256xf32> to vector<8x256xf32>
    %31 = arith.mulf %28, %30 : vector<8x256xf32>
    %cst_17 = arith.constant 0.000000e+00 : f32
    %32 = vector.broadcast %cst_17 : f32 to vector<4x256xf32>
    %33 = tpu.concatenate %18, %31, %32 in 0 : vector<4x256xf32>, vector<8x256xf32>, vector<4x256xf32> -> vector<16x256xf32>
    %c0_18 = arith.constant 0 : index
    %c0_19 = arith.constant 0 : index
    %c0_20 = arith.constant 0 : index
    %34 = vector.load %arg6[%c0_18, %c0_19, %c0_20] : memref<1x16x256xf32, #tpu.memory_space<vmem>>, vector<1x16x256xf32>
    %35 = vector.shape_cast %34 : vector<1x16x256xf32> to vector<16x256xf32>
    %36 = vector.shape_cast %33 : vector<16x256xf32> to vector<1x16x256xf32>
    tpu.vector_store %arg6[%c0_18, %c0_19, %c0_20], %36 {strides = array<i32>} : memref<1x16x256xf32, #tpu.memory_space<vmem>>, vector<1x16x256xf32>,
    return
  }
  func.func @transform_0(%arg0: i32) -> (i32, i32, i32) {
    %c0_i32 = arith.constant 0 : i32
    %c0_i32_0 = arith.constant 0 : i32
    %c0_i32_1 = arith.constant 0 : i32
    return %arg0, %c0_i32, %c0_i32_0 : i32, i32, i32
  }
  func.func @transform_1(%arg0: i32) -> (i32, i32) {
    %c0_i32 = arith.constant 0 : i32
    %c0_i32_0 = arith.constant 0 : i32
    %c0_i32_1 = arith.constant 0 : i32
    return %c0_i32, %c0_i32_0 : i32, i32
  }
  func.func @transform_2(%arg0: i32) -> (i32, i32) {
    %c0_i32 = arith.constant 0 : i32
    %c0_i32_0 = arith.constant 0 : i32
    %c0_i32_1 = arith.constant 0 : i32
    return %c0_i32, %c0_i32_0 : i32, i32
  }
  func.func @transform_3(%arg0: i32) -> (i32, i32) {
    %c0_i32 = arith.constant 0 : i32
    %c0_i32_0 = arith.constant 0 : i32
    %c0_i32_1 = arith.constant 0 : i32
    return %c0_i32, %c0_i32_0 : i32, i32
  }
  func.func @transform_4(%arg0: i32) -> (i32, i32) {
    %c0_i32 = arith.constant 0 : i32
    %c0_i32_0 = arith.constant 0 : i32
    %c0_i32_1 = arith.constant 0 : i32
    return %c0_i32, %c0_i32_0 : i32, i32
  }
  func.func @transform_5(%arg0: i32) -> (i32, i32, i32) {
    %c0_i32 = arith.constant 0 : i32
    %c0_i32_0 = arith.constant 0 : i32
    %c0_i32_1 = arith.constant 0 : i32
    return %arg0, %c0_i32, %c0_i32_0 : i32, i32, i32
  }
}

</mosaic_0001>

<bundles_post_ra>
// kernel: inception_forward.1
= control target key start
LH: loop header
LB: loop body
LE: loop exit
PB: predicated region body
PF: predicated region fallthrough
CT: control target
= control target key end

     0   :  { %v539_v3 = vmov 0   ;;  %s540_s20 = smov 127   ;;  %s541_s21 = smov 126   ;;  %v29_v4 = vlaneseq  ;;  %vm47_vm1 = vcmask 1043456   ;;  %vm70_vm3 = vcmask 1045504   ;;  %s708_s0 = inlined_call_operand.vmem [shape: f32[1,4,256], index: 0, kind: input, shape index: {}]   ;;  %s709_s1 = inlined_call_operand.vmem [shape: bf16[24,12], index: 1, kind: input, shape index: {}]   ;;  %s710_s2 = inlined_call_operand.vmem [shape: bf16[36,72], index: 2, kind: input, shape index: {}]   ;;  %s711_s3 = inlined_call_operand.vmem [shape: bf16[8,96], index: 3, kind: input, shape index: {}]   ;;  %s712_s4 = inlined_call_operand.vmem [shape: f32[1,256], index: 4, kind: input, shape index: {}]   ;;  %s713_s5 = inlined_call_operand.vmem [shape: f32[1,16,256], index: 5, kind: output, shape index: {}]  }
   0x1   :  { %v21_v0 = vld [vmem:[%s708_s0] sm:$0xff]  ;;  %109 = vmatprep.mubr.bf16.mxu0 %v539_v3  ;;  %247 = vmatprep.mubr.bf16.mxu1 %v539_v3  ;;  %vm63_vm4 = vcmask 97280   ;;  %v535_v24 = vld [vmem:[%s709_s1 + $0x8] ss:$0 sps:$4 sm:$0xff]   ;;  %vm199_vm6 = vcmask 588800   ;;  %s543_s29 = smov 120  }
   0x2   :  { %v23_v1 = vcombine.high %v21_v0, %v21_v0  ;;  %v582_v5 = vand.u32 127, %v29_v4  ;;  %v534_v23 = vld [vmem:[%s709_s1] sm:$0xff]   ;;  %s542_s1 = smov 124   ;;  %vm348_vm8 = vcmask 785408   ;;  %s544_s8 = smov 8  }
   0x4   :  { %v453_v2 = vpack.i.bf16 %v23_v1, %v21_v0  ;;  %vm31_vm0 = vcmp.lt.s32.totalorder %v582_v5, 127  ;;  %vm38_vm2 = vcmp.lt.s32.totalorder %v582_v5, 126  ;;  %vm164_vm5 = vcmp.lt.s32.totalorder %v582_v5, 124 }
   0x5   :  { %vm326_vm7 = vcmp.lt.s32.totalorder %v582_v5, 120  ;;  %vm399_vm9 = vcmp.lt.s32.totalorder %v582_v5, 8 }
   0x6   :  { %454 = vrot.lane.b32.xlu0 %v453_v2, %s540_s20 }
   0xa   :  { %459 = vrot.lane.b32.xlu0 %v453_v2, %s541_s21 }
  0x78   :  { %v455_v6 = vpop.permute.xlu0 %454 }
  0x79   :  { %v457_v7 = vunpack.i.h.bf16 %v455_v6  ;;  %v456_v8 = vunpack.i.l.bf16 %v455_v6 }
  0x7b   :  { %v32_v9 = vsel %vm31_vm0, %v456_v8, %v457_v7  ;;  %v33_v10 = vsel %vm31_vm0, %v457_v7, %v456_v8 }
  0x7c   :  { %v43_v11 = vrot.slane %v32_v9, 4  ;;  %v44_v12 = vrot.slane %v33_v10, 4  ;;  %v460_v13 = vpop.permute.xlu0 %459 }
  0x7d   :  { %v462_v14 = vunpack.i.h.bf16 %v460_v13  ;;  %v461_v15 = vunpack.i.l.bf16 %v460_v13 }
  0x7e   :  { %v49_v16 = vsel %vm47_vm1, %v23_v1, %v44_v12  ;;  %v48_v17 = vsel %vm47_vm1, %v21_v0, %v43_v11 }
  0x7f   :  { %v40_v18 = vsel %vm38_vm2, %v462_v14, %v461_v15  ;;  %v39_v19 = vsel %vm38_vm2, %v461_v15, %v462_v14 }
  0x80   :  { %v51_v20 = vpack.c.bf16 %v40_v18, %v49_v16  ;;  %v50_v21 = vpack.c.bf16 %v39_v19, %v48_v17 }
  0x82   :  { %436 = vmatprep.subr.msk.bf16.mxu0 %vm70_vm3, %v51_v20  ;;  %v72_v22 = vsel %vm70_vm3, %v50_v21, 0 }
  0x83   :  { %78 = vmatpush1.bf16.msra.mxu0 %v72_v22 }
  0x86   :  { %437 = vmatmul.mubr.msk.bf16.vlgmr.msra.gmra.mrb[0].mxu0 %vm63_vm4, %v534_v23 }
  0x87   :  { %119 = vmatprep.mubr.bf16.mxu0 %v539_v3 }
  0x8e   :  { %438 = vmatmul.mubr.msk.bf16.gmra.mrb[4].mxu0 %vm63_vm4, %v535_v24 }
  0x8f   :  { %384 = vmatprep.mubr.bf16.mxu0 %v539_v3 }
 0x159   :  { %v111_v25 = vpop.f32.mrb[0].mxu0 }
 0x15a   :  { %v128_v26 = vmax.f32 %v111_v25, 0.0  ;;  %v113_v27 = vpop.f32.mrb[1].mxu0  ;;  %v536_v25 = vld [vmem:[%s710_s2] sm:$0xff]  }
 0x15b   :  { %v129_v28 = vmax.f32 %v113_v27, 0.0  ;;  %v115_v29 = vpop.f32.mrb[2].mxu0 }
 0x15c   :  { %v130_v30 = vmax.f32 %v115_v29, 0.0  ;;  %v117_v31 = vpop.f32.mrb[3].mxu0 }
 0x15d   :  { %v131_v32 = vmax.f32 %v117_v31, 0.0  ;;  %v463_v33 = vpack.i.bf16 %v129_v28, %v128_v26 }
 0x15e   :  { %v171_v34 = vpack.c.bf16 %v130_v30, %v128_v26  ;;  %v473_v35 = vpack.i.bf16 %v130_v30, %v128_v26  ;;  %v537_v26 = vld [vmem:[%s710_s2 + $0x8] sm:$0xff]  }
 0x15f   :  { %464 = vrot.lane.b32.xlu1 %v463_v33, %s541_s21  ;;  %v172_v36 = vpack.c.bf16 %v131_v32, %v129_v28  ;;  %v483_v37 = vpack.i.bf16 %v131_v32, %v129_v28 }
 0x161   :  { %v121_v38 = vpop.f32.mrb[4].mxu0  ;;  %215 = vmatprep.subr.bf16.mxu1 %v172_v36 }
 0x162   :  { %v132_v39 = vmax.f32 %v121_v38, 0.0  ;;  %v123_v40 = vpop.f32.mrb[5].mxu0  ;;  %216 = vmatpush1.bf16.msra.mxu1 %v171_v34 }
 0x163   :  { %v133_v41 = vmax.f32 %v123_v40, 0.0  ;;  %v125_v42 = vpop.f32.mrb[6].mxu0 }
 0x164   :  { %v126_v43 = vpop.f32.mrb[7].mxu0  ;;  %v468_v44 = vpack.i.bf16 %v132_v39, %v130_v30 }
 0x165   :  { %v478_v45 = vpack.i.bf16 %v133_v41, %v131_v32  ;;  %v488_v46 = vpack.i.bf16 %v133_v41, %v132_v39 }
 0x166   :  { %469 = vrot.lane.b32.xlu1 %v468_v44, %s541_s21 }
 0x167   :  { %479 = vrot.lane.b32.xlu0 %v478_v45, %s541_s21 }
 0x16a   :  { %474 = vrot.lane.b32.xlu1 %v473_v35, %s542_s1 }
 0x16b   :  { %484 = vrot.lane.b32.xlu0 %v483_v37, %s542_s1 }
 0x16e   :  { %489 = vrot.lane.b32.xlu1 %v488_v46, %s542_s1 }
 0x1d1   :  { %v465_v47 = vpop.permute.xlu1 %464 }
 0x1d2   :  { %v467_v48 = vunpack.i.h.bf16 %v465_v47  ;;  %v466_v49 = vunpack.i.l.bf16 %v465_v47 }
 0x1d4   :  { %v149_v50 = vsel %vm38_vm2, %v467_v48, %v466_v49  ;;  %v146_v51 = vsel %vm38_vm2, %v466_v49, %v467_v48 }
 0x1d5   :  { %v174_v52 = vpack.c.bf16 %v149_v50, %v133_v41  ;;  %v173_v53 = vpack.c.bf16 %v146_v51, %v132_v39  ;;  %v538_v50 = vld [vmem:[%s710_s2 + $0x10] ss:$0 sps:$4 sm:$0x33]  }
 0x1d7   :  { %217 = vmatprep.subr.bf16.mxu1 %v174_v52 }
 0x1d8   :  { %v470_v54 = vpop.permute.xlu1 %469  ;;  %218 = vmatpush1.bf16.msra.mxu1 %v173_v53 }
 0x1d9   :  { %v472_v55 = vunpack.i.h.bf16 %v470_v54  ;;  %v471_v56 = vunpack.i.l.bf16 %v470_v54  ;;  %v480_v57 = vpop.permute.xlu0 %479 }
 0x1da   :  { %v482_v58 = vunpack.i.h.bf16 %v480_v57  ;;  %v481_v59 = vunpack.i.l.bf16 %v480_v57 }
 0x1dc   :  { %v475_v60 = vpop.permute.xlu1 %474  ;;  %v150_v61 = vsel %vm38_vm2, %v481_v59, %v471_v56  ;;  %v151_v62 = vsel %vm38_vm2, %v482_v58, %v472_v55  ;;  %v147_v63 = vsel %vm38_vm2, %v471_v56, %v481_v59  ;;  %v148_v0 = vsel %vm38_vm2, %v472_v55, %v482_v58 }
 0x1dd   :  { %v477_v1 = vunpack.i.h.bf16 %v475_v60  ;;  %v476_v2 = vunpack.i.l.bf16 %v475_v60  ;;  %v485_v6 = vpop.permute.xlu0 %484  ;;  %v176_v7 = vpack.c.bf16 %v151_v62, %v150_v61  ;;  %v175_v8 = vpack.c.bf16 %v148_v0, %v147_v63 }
 0x1de   :  { %v487_v9 = vunpack.i.h.bf16 %v485_v6  ;;  %v486_v10 = vunpack.i.l.bf16 %v485_v6 }
 0x1df   :  { %219 = vmatprep.subr.bf16.mxu1 %v176_v7 }
 0x1e0   :  { %v490_v11 = vpop.permute.xlu1 %489  ;;  %220 = vmatpush1.bf16.msra.mxu1 %v175_v8  ;;  %v168_v12 = vsel %vm164_vm5, %v486_v10, %v476_v2  ;;  %v169_v13 = vsel %vm164_vm5, %v487_v9, %v477_v1  ;;  %v165_v14 = vsel %vm164_vm5, %v476_v2, %v486_v10  ;;  %v166_v15 = vsel %vm164_vm5, %v477_v1, %v487_v9 }
 0x1e1   :  { %v492_v16 = vunpack.i.h.bf16 %v490_v11  ;;  %v491_v17 = vunpack.i.l.bf16 %v490_v11  ;;  %v178_v18 = vpack.c.bf16 %v169_v13, %v168_v12  ;;  %v177_v19 = vpack.c.bf16 %v166_v15, %v165_v14 }
 0x1e3   :  { %v170_v20 = vsel %vm164_vm5, %v492_v16, %v491_v17  ;;  %221 = vmatprep.subr.bf16.mxu1 %v178_v18  ;;  %v167_v21 = vsel %vm164_vm5, %v491_v17, %v492_v16 }
 0x1e4   :  { %v180_v22 = vpack.c.bf16 %v170_v20, %v170_v20  ;;  %222 = vmatpush1.bf16.msra.mxu1 %v177_v19  ;;  %v179_v23 = vpack.c.bf16 %v167_v21, %v167_v21 }
 0x1e6   :  { %442 = vmatprep.subr.msk.bf16.mxu1 %vm47_vm1, %v180_v22  ;;  %v210_v24 = vsel %vm47_vm1, %v179_v23, 0 }
 0x1e8   :  { %224 = vmatpush1.bf16.msra.mxu1 %v210_v24 }
 0x1eb   :  { %443 = vmatmul.mubr.msk.bf16.vlgmr.msra.gmra.mrb[0].mxu1 %vm199_vm6, %v536_v25 }
 0x1ec   :  { %257 = vmatprep.mubr.bf16.mxu1 %v539_v3 }
 0x1f3   :  { %444 = vmatmul.mubr.msk.bf16.gmra.mrb[4].mxu1 %vm199_vm6, %v537_v26 }
 0x1f4   :  { %267 = vmatprep.mubr.bf16.mxu1 %v539_v3 }
 0x1fb   :  { %445 = vmatmul.mubr.msk.bf16.gmra.mrb[8].mxu1 %vm199_vm6, %v538_v50 }
 0x2be   :  { %v249_v27 = vpop.f32.mrb[0].mxu1 }
 0x2bf   :  { %v251_v28 = vpop.f32.mrb[1].mxu1  ;;  %v276_v30 = vmax.f32 %v249_v27, 0.0 }
 0x2c0   :  { %v253_v29 = vpop.f32.mrb[2].mxu1  ;;  %v277_v33 = vmax.f32 %v251_v28, 0.0 }
 0x2c1   :  { %v278_v31 = vmax.f32 %v253_v29, 0.0  ;;  %v255_v32 = vpop.f32.mrb[3].mxu1 }
 0x2c2   :  { %v279_v34 = vmax.f32 %v255_v32, 0.0 }
 0x2c3   :  { %v335_v35 = vpack.c.bf16 %v278_v31, %v276_v30  ;;  %v493_v36 = vpack.i.bf16 %v278_v31, %v276_v30 }
 0x2c4   :  { %v498_v37 = vpack.i.bf16 %v279_v34, %v277_v33  ;;  %v336_v38 = vpack.c.bf16 %v279_v34, %v277_v33 }
 0x2c5   :  { %494 = vrot.lane.b32.xlu0 %v493_v36, %s542_s1 }
 0x2c6   :  { %499 = vrot.lane.b32.xlu1 %v498_v37, %s542_s1  ;;  %v259_v39 = vpop.f32.mrb[4].mxu1  ;;  %352 = vmatprep.subr.bf16.mxu0 %v336_v38  ;;  %v347_v38 = vld [vmem:[%s711_s3] sm:$0xf] }
 0x2c7   :  { %v261_v40 = vpop.f32.mrb[5].mxu1  ;;  %353 = vmatpush1.bf16.msra.mxu0 %v335_v35  ;;  %v280_v41 = vmax.f32 %v259_v39, 0.0 }
 0x2c8   :  { %v263_v3 = vpop.f32.mrb[6].mxu1  ;;  %v281_v44 = vmax.f32 %v261_v40, 0.0 }
 0x2c9   :  { %v282_v42 = vmax.f32 %v263_v3, 0.0  ;;  %v265_v43 = vpop.f32.mrb[7].mxu1 }
 0x2ca   :  { %v283_v45 = vmax.f32 %v265_v43, 0.0 }
 0x2cb   :  { %v337_v46 = vpack.c.bf16 %v282_v42, %v280_v41  ;;  %v503_v47 = vpack.i.bf16 %v282_v42, %v280_v41 }
 0x2cc   :  { %v513_v48 = vpack.i.bf16 %v283_v45, %v281_v44  ;;  %v338_v49 = vpack.c.bf16 %v283_v45, %v281_v44 }
 0x2cd   :  { %504 = vrot.lane.b32.xlu0 %v503_v47, %s542_s1 }
 0x2ce   :  { %514 = vrot.lane.b32.xlu1 %v513_v48, %s542_s1  ;;  %354 = vmatprep.subr.bf16.mxu0 %v338_v49  ;;  %v269_v39 = vpop.f32.mrb[8].mxu1 }
 0x2cf   :  { %355 = vmatpush1.bf16.msra.mxu0 %v337_v46  ;;  %v271_v40 = vpop.f32.mrb[9].mxu1 }
 0x2d0   :  { %v273_v3 = vpop.f32.mrb[10].mxu1 }
 0x2d1   :  { %509 = vrot.lane.b32.xlu0 %v493_v36, %s543_s29  ;;  %v274_v41 = vpop.f32.mrb[11].mxu1 }
 0x2d2   :  { %519 = vrot.lane.b32.xlu1 %v498_v37, %s543_s29 }
 0x2d5   :  { %524 = vrot.lane.b32.xlu0 %v503_v47, %s543_s29 }
 0x2d6   :  { %529 = vrot.lane.b32.xlu1 %v513_v48, %s543_s29  ;;  %v405_v48 = vshrl.u32 %v29_v4, 7 }
 0x2d8   :  { %v406_v49 = vsub.s32 0, %v405_v48  ;;  %v410_v50 = vsub.s32 1, %v405_v48 }
 0x337   :  { %v495_v51 = vpop.permute.xlu0 %494 }
 0x338   :  { %v497_v52 = vunpack.i.h.bf16 %v495_v51  ;;  %v496_v53 = vunpack.i.l.bf16 %v495_v51  ;;  %v500_v54 = vpop.permute.xlu1 %499  ;;  %v402_v51 = vld [vmem:[%s712_s4] sm:$0x3] }
 0x339   :  { %v502_v55 = vunpack.i.h.bf16 %v500_v54  ;;  %v501_v56 = vunpack.i.l.bf16 %v500_v54 }
 0x33b   :  { %v303_v57 = vsel %vm164_vm5, %v497_v52, %v502_v55  ;;  %v302_v58 = vsel %vm164_vm5, %v496_v53, %v501_v56  ;;  %v306_v59 = vsel %vm164_vm5, %v501_v56, %v496_v53  ;;  %v307_v60 = vsel %vm164_vm5, %v502_v55, %v497_v52 }
 0x33c   :  { %v339_v61 = vpack.c.bf16 %v303_v57, %v302_v58  ;;  %v340_v62 = vpack.c.bf16 %v307_v60, %v306_v59  ;;  %v407_v52 = vrot.slane %v402_v51, %v406_v49  ;;  %v411_v53 = vrot.slane %v402_v51, %v410_v50 }
 0x33d   :  { %v284_v58 = vmax.f32 %v269_v39, 0.0  ;;  %v285_v59 = vmax.f32 %v271_v40, 0.0 }
 0x33e   :  { %356 = vmatprep.subr.bf16.mxu0 %v340_v62 }
 0x33f   :  { %v505_v63 = vpop.permute.xlu0 %504  ;;  %357 = vmatpush1.bf16.msra.mxu0 %v339_v61 }
 0x340   :  { %v507_v0 = vunpack.i.h.bf16 %v505_v63  ;;  %v506_v1 = vunpack.i.l.bf16 %v505_v63  ;;  %v515_v2 = vpop.permute.xlu1 %514 }
 0x341   :  { %v517_v6 = vunpack.i.h.bf16 %v515_v2  ;;  %v516_v7 = vunpack.i.l.bf16 %v515_v2 }
 0x343   :  { %v305_v8 = vsel %vm164_vm5, %v507_v0, %v517_v6  ;;  %v304_v9 = vsel %vm164_vm5, %v506_v1, %v516_v7  ;;  %v510_v10 = vpop.permute.xlu0 %509  ;;  %v308_v11 = vsel %vm164_vm5, %v516_v7, %v506_v1  ;;  %v309_v12 = vsel %vm164_vm5, %v517_v6, %v507_v0 }
 0x344   :  { %v341_v13 = vpack.c.bf16 %v305_v8, %v304_v9  ;;  %v512_v14 = vunpack.i.h.bf16 %v510_v10  ;;  %v511_v15 = vunpack.i.l.bf16 %v510_v10  ;;  %v520_v16 = vpop.permute.xlu1 %519  ;;  %v342_v17 = vpack.c.bf16 %v309_v12, %v308_v11 }
 0x345   :  { %v522_v18 = vunpack.i.h.bf16 %v520_v16  ;;  %v521_v19 = vunpack.i.l.bf16 %v520_v16 }
 0x346   :  { %358 = vmatprep.subr.bf16.mxu0 %v342_v17 }
 0x347   :  { %v328_v20 = vsel %vm326_vm7, %v512_v14, %v522_v18  ;;  %v327_v21 = vsel %vm326_vm7, %v511_v15, %v521_v19  ;;  %v525_v22 = vpop.permute.xlu0 %524  ;;  %359 = vmatpush1.bf16.msra.mxu0 %v341_v13  ;;  %v331_v23 = vsel %vm326_vm7, %v521_v19, %v511_v15  ;;  %v332_v24 = vsel %vm326_vm7, %v522_v18, %v512_v14 }
 0x348   :  { %v343_v25 = vpack.c.bf16 %v328_v20, %v327_v21  ;;  %v527_v26 = vunpack.i.h.bf16 %v525_v22  ;;  %v526_v27 = vunpack.i.l.bf16 %v525_v22  ;;  %v530_v28 = vpop.permute.xlu1 %529  ;;  %v344_v29 = vpack.c.bf16 %v332_v24, %v331_v23 }
 0x349   :  { %v532_v30 = vunpack.i.h.bf16 %v530_v28  ;;  %v531_v31 = vunpack.i.l.bf16 %v530_v28 }
 0x34a   :  { %360 = vmatprep.subr.bf16.mxu0 %v344_v29 }
 0x34b   :  { %v330_v32 = vsel %vm326_vm7, %v527_v26, %v532_v30  ;;  %v329_v33 = vsel %vm326_vm7, %v526_v27, %v531_v31  ;;  %361 = vmatpush1.bf16.msra.mxu0 %v343_v25  ;;  %v333_v34 = vsel %vm326_vm7, %v531_v31, %v526_v27  ;;  %v334_v35 = vsel %vm326_vm7, %v532_v30, %v527_v26 }
 0x34c   :  { %v345_v36 = vpack.c.bf16 %v330_v32, %v329_v33  ;;  %v346_v37 = vpack.c.bf16 %v334_v35, %v333_v34 }
 0x34e   :  { %362 = vmatprep.subr.bf16.mxu0 %v346_v37 }
 0x34f   :  { %363 = vmatpush1.bf16.msra.mxu0 %v345_v36 }
 0x352   :  { %446 = vmatmul.mubr.msk.bf16.vlgmr.msra.gmra.mrb[8].mxu0 %vm348_vm8, %v347_v38 }
 0x425   :  { %v386_v42 = vpop.f32.mrb[8].mxu0 }
 0x426   :  { %v393_v43 = vmax.f32 %v386_v42, 0.0  ;;  %v388_v44 = vpop.f32.mrb[9].mxu0 }
 0x427   :  { %v394_v45 = vmax.f32 %v388_v44, 0.0  ;;  %v390_v46 = vpop.f32.mrb[10].mxu0 }
 0x428   :  { %395 = vrot.lane.b32.xlu0 %v393_v43, %s544_s8  ;;  %v391_v47 = vpop.f32.mrb[11].mxu0 }
 0x429   :  { %397 = vrot.lane.b32.xlu1 %v394_v45, %s544_s8 }
 0x49a   :  { %v396_v54 = vpop.permute.xlu0 %395 }
 0x49b   :  { %v398_v55 = vpop.permute.xlu1 %397 }
 0x49c   :  { %v400_v56 = vsel %vm399_vm9, %v396_v54, %v398_v55  ;;  %v401_v57 = vsel %vm399_vm9, %v398_v55, %v396_v54 }
 0x49d   :  { %v414_v60 = vmul.f32 %v407_v52, %v401_v57  ;;  %v415_v61 = vmul.f32 %v411_v53, %v400_v56 }
 0x49f   :  { %v418_v62 = vrot.slane %v414_v60, 4  ;;  %v419_v4 = vrot.slane %v415_v61, 4 }
 0x4a1   :  { %v422_v63 = vsel %vm47_vm1, %v284_v58, %v418_v62  ;;  %v423_v0 = vsel %vm47_vm1, %v285_v59, %v419_v4  ;;  %v424_v1 = vsel %vm47_vm1, %v418_v62, 0.0  ;;  %v425_v5 = vsel %vm47_vm1, %v419_v4, 0.0 }
 0x4a2   :  { %426 = vst [vmem:[%s713_s5] sm:$0xff] %v422_v63  ;;  %427 = vst [vmem:[%s713_s5 + $0x8] sm:$0xff] %v423_v0 }
 0x4a3   :  { %428 = vst [vmem:[%s713_s5 + $0x10] sm:$0xff] %v424_v1  ;;  %429 = vst [vmem:[%s713_s5 + $0x18] sm:$0xff] %v425_v5 }

</bundles_post_ra>
